<compile_context>
chip_gen: v6e
topology: v6e:2x2x1
jax: 0.10.0
libtpu: 0.0.40
codegen_flags: <defaults>
</compile_context>

<pallas_src>
import functools

import jax
import jax.numpy as jnp
from jax import lax
from jax.experimental import pallas as pl
from jax.experimental.pallas import tpu as pltpu

FEAT_DIM = 64     # dim of q (embeddings before projection head)
EMBED_DIM = 32    # encoder_params.embedding_dim (projection head output)
USE_NORM = True   # encoder_params.use_norm
TAU = 0.1         # temperature
OUT_LANES = 128   # lane-dense eval output slab width (q | proj | pad)

_VMEM = pltpu.MemorySpace.VMEM
_SMEM = pltpu.MemorySpace.SMEM


def _pick_tile(n, pref=256):
    """Largest row tile that divides n and keeps sublane tiles 8-aligned."""
    for t in (pref, 128, 64, 32, 16, 8):
        if t <= n and n % t == 0:
            return t
    return n  # whole-array block (exempt from the (8,128) divisibility rule)


def _vmem_limit(est_bytes):
    return int(min(max(2 * est_bytes, 32 * 1024 * 1024), 64 * 1024 * 1024))


# --------------------------------------------------------------------------
# Shared encoder math on one row tile.
#   GAP is folded into w_pool (== repeat(wf, HW)/HW), so the first dot does
#   pool + feature projection in a single MXU matmul on a lane-dense operand.
# --------------------------------------------------------------------------
def _encode_tile(x, wp, bf, w1, b1, w2, b2):
    q = jnp.dot(x, wp, preferred_element_type=jnp.float32) + bf          # (T, F)
    h = jnp.dot(q.astype(jnp.bfloat16), w1,
                preferred_element_type=jnp.float32) + b1
    h = jnp.maximum(h, 0.0)
    proj = jnp.dot(h.astype(jnp.bfloat16), w2,
                   preferred_element_type=jnp.float32) + b2              # (T, E)
    return q, proj


# --------------------------------------------------------------------------
# Fused training kernel: per-tile encoder for both views (pipelined over the
# batch grid), then NT-Xent loss on the accumulated projections at the last
# grid step.
# --------------------------------------------------------------------------
def _simclr_train_kernel(xq_ref, xk_ref, wp_ref, bf_ref, w1_ref, b1_ref,
                         w2_ref, b2_ref, loss_ref, pq_sc, pk_sc,
                         *, tau, n_rows):
    i = pl.program_id(0)
    wp = wp_ref[...]
    bf = bf_ref[...]
    w1 = w1_ref[...]
    b1 = b1_ref[...]
    w2 = w2_ref[...]
    b2 = b2_ref[...]

    _, proj_q = _encode_tile(xq_ref[...], wp, bf, w1, b1, w2, b2)
    _, proj_k = _encode_tile(xk_ref[...], wp, bf, w1, b1, w2, b2)

    # nt_xent_loss re-normalizes its inputs, so the encoder's own use_norm
    # step is redundant on the training path; normalize once here (rsqrt*x).
    pq_sc[i] = proj_q * lax.rsqrt(jnp.sum(proj_q * proj_q, axis=-1, keepdims=True))
    pk_sc[i] = proj_k * lax.rsqrt(jnp.sum(proj_k * proj_k, axis=-1, keepdims=True))

    @pl.when(i == pl.num_programs(0) - 1)
    def _():
        inv_tau = 1.0 / tau
        aq = pq_sc[...].reshape(n_rows, EMBED_DIM)   # a_cap (unit-norm rows)
        ak = pk_sc[...].reshape(n_rows, EMBED_DIM)   # b_cap (unit-norm rows)

        def exp_sim(u, v):
            s = lax.dot_general(u, v, (((1,), (1,)), ((), ())),
                                preferred_element_type=jnp.float32)
            # rows unit-norm => sim <= 1; shift by 1/tau so exp never overflows
            return jnp.exp(s * inv_tau - inv_tau)

        e_qq = exp_sim(aq, aq)
        e_kk = exp_sim(ak, ak)
        e_qk = exp_sim(aq, ak)
        e_kq = exp_sim(ak, aq)

        # Explicit diagonal mask of the self-similarity blocks (exactly the
        # reference's `sum_of_rows - diag`, without f32 cancellation).
        r = lax.broadcasted_iota(jnp.int32, (n_rows, n_rows), 0)
        c = lax.broadcasted_iota(jnp.int32, (n_rows, n_rows), 1)
        off_diag = (r != c).astype(jnp.float32)

        den_q = (jnp.sum(e_qq * off_diag, axis=-1, keepdims=True)
                 + jnp.sum(e_qk, axis=-1, keepdims=True))
        den_k = (jnp.sum(e_kk * off_diag, axis=-1, keepdims=True)
                 + jnp.sum(e_kq, axis=-1, keepdims=True))

        # positive-pair cosine (== dot, rows unit-norm); same for both halves.
        pos = jnp.sum(aq * ak, axis=-1, keepdims=True)

        # mean_i[-log(exp(pos/tau)/den)] with den in the shifted domain:
        #   = mean(log den_shift) + 1/tau - mean(pos)/tau
        log_den = 0.5 * (jnp.mean(jnp.log(den_q)) + jnp.mean(jnp.log(den_k)))
        loss_ref[0] = log_den + inv_tau * (1.0 - jnp.mean(pos))


# --------------------------------------------------------------------------
# Eval kernel: encoder only, one lane-dense (T, 128) output slab per tile.
# --------------------------------------------------------------------------
def _encoder_eval_kernel(x_ref, wp_ref, bf_ref, w1_ref, b1_ref, w2_ref, b2_ref,
                         out_ref, *, use_norm):
    q, proj = _encode_tile(x_ref[...], wp_ref[...], bf_ref[...], w1_ref[...],
                           b1_ref[...], w2_ref[...], b2_ref[...])
    if use_norm:
        proj = proj * lax.rsqrt(jnp.sum(proj * proj, axis=-1, keepdims=True))
    pad = jnp.zeros((q.shape[0], OUT_LANES - FEAT_DIM - EMBED_DIM), jnp.float32)
    out_ref[...] = jnp.concatenate([q, proj, pad], axis=-1)   # one unmasked store


# --------------------------------------------------------------------------
# Wrappers
# --------------------------------------------------------------------------
def _prep_weights(params, hw):
    # Fold GAP (1/HW ones vector) into the feature weight; bf16 MXU operands.
    w_pool = (jnp.repeat(params["wf"], hw, axis=0) * (1.0 / hw)).astype(jnp.bfloat16)
    return (w_pool, params["bf"],
            params["w1"].astype(jnp.bfloat16), params["b1"],
            params["w2"].astype(jnp.bfloat16), params["b2"])


def _const_spec(arr):
    nd = arr.ndim
    return pl.BlockSpec(arr.shape, lambda i, _nd=nd: (0,) * _nd)


def simclr_train_loss(params, im_q, im_k, temperature=TAU):
    N, C, H, W = im_q.shape
    chw = C * H * W
    # Lane-dense (N, C*H*W) operands; bf16 halves HBM/VMEM bytes for x.
    xq = im_q.reshape(N, chw).astype(jnp.bfloat16)
    xk = im_k.reshape(N, chw).astype(jnp.bfloat16)
    weights = _prep_weights(params, H * W)

    tb = _pick_tile(N)
    n_tiles = N // tb
    x_spec = pl.BlockSpec((tb, chw), lambda i: (i, 0))

    est = (2 * 2 * tb * chw * 2                                   # x tiles, dbl-buffered
           + (chw * FEAT_DIM + FEAT_DIM * FEAT_DIM + FEAT_DIM * EMBED_DIM) * 2
           + 2 * N * EMBED_DIM * 4                                # projection scratch
           + 4 * N * N * 4 + (1 << 20))                           # final-step sim blocks

    kern = functools.partial(_simclr_train_kernel, tau=float(temperature), n_rows=N)
    loss = pl.pallas_call(
        kern,
        out_shape=jax.ShapeDtypeStruct((1,), jnp.float32),
        grid=(n_tiles,),
        in_specs=[x_spec, x_spec] + [_const_spec(w) for w in weights],
        out_specs=pl.BlockSpec(memory_space=_SMEM),               # scalar -> SMEM
        scratch_shapes=[pltpu.VMEM((n_tiles, tb, EMBED_DIM), jnp.float32),
                        pltpu.VMEM((n_tiles, tb, EMBED_DIM), jnp.float32)],
        compiler_params=pltpu.CompilerParams(
            dimension_semantics=("arbitrary",),    # scratch carry + final-step loss
            vmem_limit_bytes=_vmem_limit(est)),
    )(xq, xk, *weights)
    return loss[0]


def encoder_apply(params, im):
    N, C, H, W = im.shape
    chw = C * H * W
    x = im.reshape(N, chw).astype(jnp.bfloat16)
    weights = _prep_weights(params, H * W)

    tb = _pick_tile(N)
    est = (2 * tb * chw * 2 + 2 * tb * OUT_LANES * 4
           + (chw * FEAT_DIM + FEAT_DIM * FEAT_DIM + FEAT_DIM * EMBED_DIM) * 2
           + (1 << 20))

    kern = functools.partial(_encoder_eval_kernel, use_norm=USE_NORM)
    slab = pl.pallas_call(
        kern,
        out_shape=jax.ShapeDtypeStruct((N, OUT_LANES), jnp.float32),
        grid=(N // tb,),
        in_specs=[pl.BlockSpec((tb, chw), lambda i: (i, 0))]
                 + [_const_spec(w) for w in weights],
        out_specs=pl.BlockSpec((tb, OUT_LANES), lambda i: (i, 0)),
        compiler_params=pltpu.CompilerParams(
            dimension_semantics=("parallel",),     # no carry -> megacore-friendly
            vmem_limit_bytes=_vmem_limit(est)),
    )(x, *weights)
    return slab[:, :FEAT_DIM], slab[:, FEAT_DIM:FEAT_DIM + EMBED_DIM]


def simclr_forward(params, im_q, im_k=None, training=True, temperature=TAU):
    if not training:
        return encoder_apply(params, im_q)
    return simclr_train_loss(params, im_q, im_k, temperature)


def init_params(key, in_channels):
    k1, k2, k3 = jax.random.split(key, 3)
    return {
        "wf": 0.1 * jax.random.normal(k1, (in_channels, FEAT_DIM), jnp.float32),
        "bf": jnp.zeros((1, FEAT_DIM), jnp.float32),
        "w1": 0.1 * jax.random.normal(k2, (FEAT_DIM, FEAT_DIM), jnp.float32),
        "b1": jnp.zeros((1, FEAT_DIM), jnp.float32),
        "w2": 0.1 * jax.random.normal(k3, (FEAT_DIM, EMBED_DIM), jnp.float32),
        "b2": jnp.zeros((1, EMBED_DIM), jnp.float32),
    }


if __name__ == "__main__":
    key = jax.random.PRNGKey(0)
    kq, kk, kp = jax.random.split(key, 3)
    # small NCHW inputs: batch=2, channels=4, spatial=16x16
    im_q = jax.random.normal(kq, (2, 4, 16, 16), jnp.float32)
    im_k = jax.random.normal(kk, (2, 4, 16, 16), jnp.float32)
    params = init_params(kp, in_channels=4)

    # training mode -> scalar NT-Xent loss (single fused, pipelined kernel)
    loss = simclr_forward(params, im_q, im_k, training=True)
    loss = jax.block_until_ready(loss)

    # eval mode -> (q, proj_q)
    q, proj_q = simclr_forward(params, im_q, training=False)
    jax.block_until_ready(proj_q)

    assert loss.shape == () and bool(jnp.isfinite(loss))
    assert q.shape == (2, FEAT_DIM) and proj_q.shape == (2, EMBED_DIM)
    print("KERNEL_OK")
</pallas_src>

<mosaic_0001>
module attributes {stable_mosaic.version = 11 : i64} {
  func.func @_simclr_train_kernel(%arg0: i32, %arg1: memref<2x1024xbf16, #tpu.memory_space<vmem>>, %arg2: memref<2x1024xbf16, #tpu.memory_space<vmem>>, %arg3: memref<1024x64xbf16, #tpu.memory_space<vmem>>, %arg4: memref<1x64xf32, #tpu.memory_space<vmem>>, %arg5: memref<64x64xbf16, #tpu.memory_space<vmem>>, %arg6: memref<1x64xf32, #tpu.memory_space<vmem>>, %arg7: memref<64x32xbf16, #tpu.memory_space<vmem>>, %arg8: memref<1x32xf32, #tpu.memory_space<vmem>>, %arg9: memref<1xf32, #tpu.memory_space<smem>>, %arg10: memref<1x2x32xf32, #tpu.memory_space<vmem>>, %arg11: memref<1x2x32xf32, #tpu.memory_space<vmem>>) attributes {dimension_semantics = [#tpu.dimension_semantics<arbitrary>], iteration_bounds = array<i64: 1>, scalar_prefetch = 0 : i64, scratch_operands = 2 : i64, tpu.core_type = #tpu.core_type<tc>, window_params = [{transform_indices = @transform_0, window_bounds = array<i64: 2, 1024>}, {transform_indices = @transform_1, window_bounds = array<i64: 2, 1024>}, {pipeline_mode = #tpu.pipeline_mode<synchronous>, transform_indices = @transform_2, window_bounds = array<i64: 1024, 64>}, {pipeline_mode = #tpu.pipeline_mode<synchronous>, transform_indices = @transform_3, window_bounds = array<i64: 1, 64>}, {pipeline_mode = #tpu.pipeline_mode<synchronous>, transform_indices = @transform_4, window_bounds = array<i64: 64, 64>}, {pipeline_mode = #tpu.pipeline_mode<synchronous>, transform_indices = @transform_5, window_bounds = array<i64: 1, 64>}, {pipeline_mode = #tpu.pipeline_mode<synchronous>, transform_indices = @transform_6, window_bounds = array<i64: 64, 32>}, {pipeline_mode = #tpu.pipeline_mode<synchronous>, transform_indices = @transform_7, window_bounds = array<i64: 1, 32>}, {transform_indices = @transform_8, window_bounds = array<i64: 1>}]} {
    %c0 = arith.constant 0 : index
    %c0_0 = arith.constant 0 : index
    %0 = vector.load %arg3[%c0, %c0_0] : memref<1024x64xbf16, #tpu.memory_space<vmem>>, vector<1024x64xbf16>
    %c0_1 = arith.constant 0 : index
    %c0_2 = arith.constant 0 : index
    %1 = vector.load %arg4[%c0_1, %c0_2] : memref<1x64xf32, #tpu.memory_space<vmem>>, vector<1x64xf32>
    %c0_3 = arith.constant 0 : index
    %c0_4 = arith.constant 0 : index
    %2 = vector.load %arg5[%c0_3, %c0_4] : memref<64x64xbf16, #tpu.memory_space<vmem>>, vector<64x64xbf16>
    %c0_5 = arith.constant 0 : index
    %c0_6 = arith.constant 0 : index
    %3 = vector.load %arg6[%c0_5, %c0_6] : memref<1x64xf32, #tpu.memory_space<vmem>>, vector<1x64xf32>
    %c0_7 = arith.constant 0 : index
    %c0_8 = arith.constant 0 : index
    %4 = vector.load %arg7[%c0_7, %c0_8] : memref<64x32xbf16, #tpu.memory_space<vmem>>, vector<64x32xbf16>
    %c0_9 = arith.constant 0 : index
    %c0_10 = arith.constant 0 : index
    %5 = vector.load %arg8[%c0_9, %c0_10] : memref<1x32xf32, #tpu.memory_space<vmem>>, vector<1x32xf32>
    %c0_11 = arith.constant 0 : index
    %c0_12 = arith.constant 0 : index
    %6 = vector.load %arg1[%c0_11, %c0_12] : memref<2x1024xbf16, #tpu.memory_space<vmem>>, vector<2x1024xbf16>
    %cst = arith.constant dense<0.000000e+00> : vector<2x64xf32>
    %7 = tpu.matmul %6, %0, %cst {dimension_numbers = #tpu.dot_dimension_numbers<[1], [0], [0], [1], [0, 0, 1, 1], [], []>} : vector<2x1024xbf16>, vector<1024x64xbf16>, vector<2x64xf32> -> vector<2x64xf32>
    %8 = vector.broadcast %1 : vector<1x64xf32> to vector<2x64xf32>
    %9 = arith.addf %7, %8 : vector<2x64xf32>
    %10 = arith.truncf %9 : vector<2x64xf32> to vector<2x64xbf16>
    %cst_13 = arith.constant dense<0.000000e+00> : vector<2x64xf32>
    %11 = tpu.matmul %10, %2, %cst_13 {dimension_numbers = #tpu.dot_dimension_numbers<[1], [0], [0], [1], [0, 0, 1, 1], [], []>} : vector<2x64xbf16>, vector<64x64xbf16>, vector<2x64xf32> -> vector<2x64xf32>
    %12 = vector.broadcast %3 : vector<1x64xf32> to vector<2x64xf32>
    %13 = arith.addf %11, %12 : vector<2x64xf32>
    %cst_14 = arith.constant 0.000000e+00 : f32
    %14 = vector.broadcast %cst_14 : f32 to vector<2x64xf32>
    %15 = arith.maximumf %13, %14 : vector<2x64xf32>
    %16 = arith.truncf %15 : vector<2x64xf32> to vector<2x64xbf16>
    %cst_15 = arith.constant dense<0.000000e+00> : vector<2x32xf32>
    %17 = tpu.matmul %16, %4, %cst_15 {dimension_numbers = #tpu.dot_dimension_numbers<[1], [0], [0], [1], [0, 0, 1, 1], [], []>} : vector<2x64xbf16>, vector<64x32xbf16>, vector<2x32xf32> -> vector<2x32xf32>
    %18 = vector.broadcast %5 : vector<1x32xf32> to vector<2x32xf32>
    %19 = arith.addf %17, %18 : vector<2x32xf32>
    %c0_16 = arith.constant 0 : index
    %c0_17 = arith.constant 0 : index
    %20 = vector.load %arg2[%c0_16, %c0_17] : memref<2x1024xbf16, #tpu.memory_space<vmem>>, vector<2x1024xbf16>
    %cst_18 = arith.constant dense<0.000000e+00> : vector<2x64xf32>
    %21 = tpu.matmul %20, %0, %cst_18 {dimension_numbers = #tpu.dot_dimension_numbers<[1], [0], [0], [1], [0, 0, 1, 1], [], []>} : vector<2x1024xbf16>, vector<1024x64xbf16>, vector<2x64xf32> -> vector<2x64xf32>
    %22 = vector.broadcast %1 : vector<1x64xf32> to vector<2x64xf32>
    %23 = arith.addf %21, %22 : vector<2x64xf32>
    %24 = arith.truncf %23 : vector<2x64xf32> to vector<2x64xbf16>
    %cst_19 = arith.constant dense<0.000000e+00> : vector<2x64xf32>
    %25 = tpu.matmul %24, %2, %cst_19 {dimension_numbers = #tpu.dot_dimension_numbers<[1], [0], [0], [1], [0, 0, 1, 1], [], []>} : vector<2x64xbf16>, vector<64x64xbf16>, vector<2x64xf32> -> vector<2x64xf32>
    %26 = vector.broadcast %3 : vector<1x64xf32> to vector<2x64xf32>
    %27 = arith.addf %25, %26 : vector<2x64xf32>
    %cst_20 = arith.constant 0.000000e+00 : f32
    %28 = vector.broadcast %cst_20 : f32 to vector<2x64xf32>
    %29 = arith.maximumf %27, %28 : vector<2x64xf32>
    %30 = arith.truncf %29 : vector<2x64xf32> to vector<2x64xbf16>
    %cst_21 = arith.constant dense<0.000000e+00> : vector<2x32xf32>
    %31 = tpu.matmul %30, %4, %cst_21 {dimension_numbers = #tpu.dot_dimension_numbers<[1], [0], [0], [1], [0, 0, 1, 1], [], []>} : vector<2x64xbf16>, vector<64x32xbf16>, vector<2x32xf32> -> vector<2x32xf32>
    %32 = vector.broadcast %5 : vector<1x32xf32> to vector<2x32xf32>
    %33 = arith.addf %31, %32 : vector<2x32xf32>
    %34 = arith.mulf %19, %19 : vector<2x32xf32>
    %cst_22 = arith.constant dense<0.000000e+00> : vector<2xf32>
    %35 = vector.multi_reduction <add>, %34, %cst_22 [1] : vector<2x32xf32> to vector<2xf32>
    %36 = vector.shape_cast %35 : vector<2xf32> to vector<2x1xf32>
    %37 = math.rsqrt %36 : vector<2x1xf32>
    %38 = vector.broadcast %37 : vector<2x1xf32> to vector<2x32xf32>
    %39 = arith.mulf %19, %38 : vector<2x32xf32>
    %40 = arith.index_cast %arg0 : i32 to index
    %c0_23 = arith.constant 0 : index
    %c0_24 = arith.constant 0 : index
    %41 = vector.load %arg10[%40, %c0_23, %c0_24] : memref<1x2x32xf32, #tpu.memory_space<vmem>>, vector<1x2x32xf32>
    %42 = vector.shape_cast %41 : vector<1x2x32xf32> to vector<2x32xf32>
    %43 = vector.shape_cast %39 : vector<2x32xf32> to vector<1x2x32xf32>
    tpu.vector_store %arg10[%40, %c0_23, %c0_24], %43 {strides = array<i32>} : memref<1x2x32xf32, #tpu.memory_space<vmem>>, vector<1x2x32xf32>,
    %44 = arith.mulf %33, %33 : vector<2x32xf32>
    %cst_25 = arith.constant dense<0.000000e+00> : vector<2xf32>
    %45 = vector.multi_reduction <add>, %44, %cst_25 [1] : vector<2x32xf32> to vector<2xf32>
    %46 = vector.shape_cast %45 : vector<2xf32> to vector<2x1xf32>
    %47 = math.rsqrt %46 : vector<2x1xf32>
    %48 = vector.broadcast %47 : vector<2x1xf32> to vector<2x32xf32>
    %49 = arith.mulf %33, %48 : vector<2x32xf32>
    %50 = arith.index_cast %arg0 : i32 to index
    %c0_26 = arith.constant 0 : index
    %c0_27 = arith.constant 0 : index
    %51 = vector.load %arg11[%50, %c0_26, %c0_27] : memref<1x2x32xf32, #tpu.memory_space<vmem>>, vector<1x2x32xf32>
    %52 = vector.shape_cast %51 : vector<1x2x32xf32> to vector<2x32xf32>
    %53 = vector.shape_cast %49 : vector<2x32xf32> to vector<1x2x32xf32>
    tpu.vector_store %arg11[%50, %c0_26, %c0_27], %53 {strides = array<i32>} : memref<1x2x32xf32, #tpu.memory_space<vmem>>, vector<1x2x32xf32>,
    %c0_i32 = arith.constant 0 : i32
    %54 = arith.cmpi eq, %arg0, %c0_i32 : i32
    %55 = arith.extui %54 : i1 to i32
    %c0_i32_28 = arith.constant 0 : i32
    %56 = arith.cmpi ne, %55, %c0_i32_28 : i32
    scf.if %56 {
      %c0_29 = arith.constant 0 : index
      %c0_30 = arith.constant 0 : index
      %c0_31 = arith.constant 0 : index
      %57 = vector.load %arg10[%c0_29, %c0_30, %c0_31] : memref<1x2x32xf32, #tpu.memory_space<vmem>>, vector<1x2x32xf32>
      %58 = vector.shape_cast %57 : vector<1x2x32xf32> to vector<2x32xf32>
      %c0_32 = arith.constant 0 : index
      %c0_33 = arith.constant 0 : index
      %c0_34 = arith.constant 0 : index
      %59 = vector.load %arg11[%c0_32, %c0_33, %c0_34] : memref<1x2x32xf32, #tpu.memory_space<vmem>>, vector<1x2x32xf32>
      %60 = vector.shape_cast %59 : vector<1x2x32xf32> to vector<2x32xf32>
      %cst_35 = arith.constant dense<0.000000e+00> : vector<2x2xf32>
      %61 = tpu.matmul %58, %58, %cst_35 {dimension_numbers = #tpu.dot_dimension_numbers<[1], [1], [0], [0], [0, 0, 1, 0], [], []>} : vector<2x32xf32>, vector<2x32xf32>, vector<2x2xf32> -> vector<2x2xf32>
      %cst_36 = arith.constant 1.000000e+01 : f32
      %62 = vector.broadcast %cst_36 : f32 to vector<2x2xf32>
      %63 = arith.mulf %61, %62 : vector<2x2xf32>
      %cst_37 = arith.constant 1.000000e+01 : f32
      %64 = vector.broadcast %cst_37 : f32 to vector<2x2xf32>
      %65 = arith.subf %63, %64 : vector<2x2xf32>
      %66 = math.exp %65 : vector<2x2xf32>
      %cst_38 = arith.constant dense<0.000000e+00> : vector<2x2xf32>
      %67 = tpu.matmul %60, %60, %cst_38 {dimension_numbers = #tpu.dot_dimension_numbers<[1], [1], [0], [0], [0, 0, 1, 0], [], []>} : vector<2x32xf32>, vector<2x32xf32>, vector<2x2xf32> -> vector<2x2xf32>
      %cst_39 = arith.constant 1.000000e+01 : f32
      %68 = vector.broadcast %cst_39 : f32 to vector<2x2xf32>
      %69 = arith.mulf %67, %68 : vector<2x2xf32>
      %cst_40 = arith.constant 1.000000e+01 : f32
      %70 = vector.broadcast %cst_40 : f32 to vector<2x2xf32>
      %71 = arith.subf %69, %70 : vector<2x2xf32>
      %72 = math.exp %71 : vector<2x2xf32>
      %cst_41 = arith.constant dense<0.000000e+00> : vector<2x2xf32>
      %73 = tpu.matmul %58, %60, %cst_41 {dimension_numbers = #tpu.dot_dimension_numbers<[1], [1], [0], [0], [0, 0, 1, 0], [], []>} : vector<2x32xf32>, vector<2x32xf32>, vector<2x2xf32> -> vector<2x2xf32>
      %cst_42 = arith.constant 1.000000e+01 : f32
      %74 = vector.broadcast %cst_42 : f32 to vector<2x2xf32>
      %75 = arith.mulf %73, %74 : vector<2x2xf32>
      %cst_43 = arith.constant 1.000000e+01 : f32
      %76 = vector.broadcast %cst_43 : f32 to vector<2x2xf32>
      %77 = arith.subf %75, %76 : vector<2x2xf32>
      %78 = math.exp %77 : vector<2x2xf32>
      %cst_44 = arith.constant dense<0.000000e+00> : vector<2x2xf32>
      %79 = tpu.matmul %60, %58, %cst_44 {dimension_numbers = #tpu.dot_dimension_numbers<[1], [1], [0], [0], [0, 0, 1, 0], [], []>} : vector<2x32xf32>, vector<2x32xf32>, vector<2x2xf32> -> vector<2x2xf32>
      %cst_45 = arith.constant 1.000000e+01 : f32
      %80 = vector.broadcast %cst_45 : f32 to vector<2x2xf32>
      %81 = arith.mulf %79, %80 : vector<2x2xf32>
      %cst_46 = arith.constant 1.000000e+01 : f32
      %82 = vector.broadcast %cst_46 : f32 to vector<2x2xf32>
      %83 = arith.subf %81, %82 : vector<2x2xf32>
      %84 = math.exp %83 : vector<2x2xf32>
      %85 = tpu.iota {dimensions = array<i32: 0>} : vector<2x2xi32>
      %86 = tpu.iota {dimensions = array<i32: 1>} : vector<2x2xi32>
      %87 = arith.cmpi ne, %85, %86 : vector<2x2xi32>
      %88 = arith.extui %87 : vector<2x2xi1> to vector<2x2xi32>
      %89 = arith.sitofp %88 : vector<2x2xi32> to vector<2x2xf32>
      %90 = arith.mulf %66, %89 : vector<2x2xf32>
      %cst_47 = arith.constant dense<0.000000e+00> : vector<2xf32>
      %91 = vector.multi_reduction <add>, %90, %cst_47 [1] : vector<2x2xf32> to vector<2xf32>
      %92 = vector.shape_cast %91 : vector<2xf32> to vector<2x1xf32>
      %cst_48 = arith.constant dense<0.000000e+00> : vector<2xf32>
      %93 = vector.multi_reduction <add>, %78, %cst_48 [1] : vector<2x2xf32> to vector<2xf32>
      %94 = vector.shape_cast %93 : vector<2xf32> to vector<2x1xf32>
      %95 = arith.addf %92, %94 : vector<2x1xf32>
      %96 = arith.mulf %72, %89 : vector<2x2xf32>
      %cst_49 = arith.constant dense<0.000000e+00> : vector<2xf32>
      %97 = vector.multi_reduction <add>, %96, %cst_49 [1] : vector<2x2xf32> to vector<2xf32>
      %98 = vector.shape_cast %97 : vector<2xf32> to vector<2x1xf32>
      %cst_50 = arith.constant dense<0.000000e+00> : vector<2xf32>
      %99 = vector.multi_reduction <add>, %84, %cst_50 [1] : vector<2x2xf32> to vector<2xf32>
      %100 = vector.shape_cast %99 : vector<2xf32> to vector<2x1xf32>
      %101 = arith.addf %98, %100 : vector<2x1xf32>
      %102 = arith.mulf %58, %60 : vector<2x32xf32>
      %cst_51 = arith.constant dense<0.000000e+00> : vector<2xf32>
      %103 = vector.multi_reduction <add>, %102, %cst_51 [1] : vector<2x32xf32> to vector<2xf32>
      %104 = vector.shape_cast %103 : vector<2xf32> to vector<2x1xf32>
      %105 = math.log %95 : vector<2x1xf32>
      %106 = vector.shape_cast %105 : vector<2x1xf32> to vector<1x2x1xf32>
      %cst_52 = arith.constant dense<0.000000e+00> : vector<1xf32>
      %107 = vector.multi_reduction <add>, %106, %cst_52 [1, 2] : vector<1x2x1xf32> to vector<1xf32>
      %108 = vector.shape_cast %107 : vector<1xf32> to vector<1x1x1xf32>
      %109 = vector.extract %108[0, 0, 0] : f32 from vector<1x1x1xf32>
      %cst_53 = arith.constant 2.000000e+00 : f32
      %110 = arith.divf %109, %cst_53 : f32
      %111 = math.log %101 : vector<2x1xf32>
      %112 = vector.shape_cast %111 : vector<2x1xf32> to vector<1x2x1xf32>
      %cst_54 = arith.constant dense<0.000000e+00> : vector<1xf32>
      %113 = vector.multi_reduction <add>, %112, %cst_54 [1, 2] : vector<1x2x1xf32> to vector<1xf32>
      %114 = vector.shape_cast %113 : vector<1xf32> to vector<1x1x1xf32>
      %115 = vector.extract %114[0, 0, 0] : f32 from vector<1x1x1xf32>
      %cst_55 = arith.constant 2.000000e+00 : f32
      %116 = arith.divf %115, %cst_55 : f32
      %117 = arith.addf %110, %116 : f32
      %cst_56 = arith.constant 5.000000e-01 : f32
      %118 = arith.mulf %cst_56, %117 : f32
      %119 = vector.shape_cast %104 : vector<2x1xf32> to vector<1x2x1xf32>
      %cst_57 = arith.constant dense<0.000000e+00> : vector<1xf32>
      %120 = vector.multi_reduction <add>, %119, %cst_57 [1, 2] : vector<1x2x1xf32> to vector<1xf32>
      %121 = vector.shape_cast %120 : vector<1xf32> to vector<1x1x1xf32>
      %122 = vector.extract %121[0, 0, 0] : f32 from vector<1x1x1xf32>
      %cst_58 = arith.constant 2.000000e+00 : f32
      %123 = arith.divf %122, %cst_58 : f32
      %cst_59 = arith.constant 1.000000e+00 : f32
      %124 = arith.subf %cst_59, %123 : f32
      %cst_60 = arith.constant 1.000000e+01 : f32
      %125 = arith.mulf %cst_60, %124 : f32
      %126 = arith.addf %118, %125 : f32
      %c0_61 = arith.constant 0 : index
      %127 = memref.load %arg9[%c0_61] : memref<1xf32, #tpu.memory_space<smem>>
      memref.store %126, %arg9[%c0_61] : memref<1xf32, #tpu.memory_space<smem>>
    } else {
    }
    return
  }
  func.func @transform_0(%arg0: i32) -> (i32, i32) {
    %c0_i32 = arith.constant 0 : i32
    %c0_i32_0 = arith.constant 0 : i32
    return %arg0, %c0_i32 : i32, i32
  }
  func.func @transform_1(%arg0: i32) -> (i32, i32) {
    %c0_i32 = arith.constant 0 : i32
    %c0_i32_0 = arith.constant 0 : i32
    return %arg0, %c0_i32 : i32, i32
  }
  func.func @transform_2(%arg0: i32) -> (i32, i32) {
    %c0_i32 = arith.constant 0 : i32
    %c0_i32_0 = arith.constant 0 : i32
    %c0_i32_1 = arith.constant 0 : i32
    return %c0_i32, %c0_i32_0 : i32, i32
  }
  func.func @transform_3(%arg0: i32) -> (i32, i32) {
    %c0_i32 = arith.constant 0 : i32
    %c0_i32_0 = arith.constant 0 : i32
    %c0_i32_1 = arith.constant 0 : i32
    return %c0_i32, %c0_i32_0 : i32, i32
  }
  func.func @transform_4(%arg0: i32) -> (i32, i32) {
    %c0_i32 = arith.constant 0 : i32
    %c0_i32_0 = arith.constant 0 : i32
    %c0_i32_1 = arith.constant 0 : i32
    return %c0_i32, %c0_i32_0 : i32, i32
  }
  func.func @transform_5(%arg0: i32) -> (i32, i32) {
    %c0_i32 = arith.constant 0 : i32
    %c0_i32_0 = arith.constant 0 : i32
    %c0_i32_1 = arith.constant 0 : i32
    return %c0_i32, %c0_i32_0 : i32, i32
  }
  func.func @transform_6(%arg0: i32) -> (i32, i32) {
    %c0_i32 = arith.constant 0 : i32
    %c0_i32_0 = arith.constant 0 : i32
    %c0_i32_1 = arith.constant 0 : i32
    return %c0_i32, %c0_i32_0 : i32, i32
  }
  func.func @transform_7(%arg0: i32) -> (i32, i32) {
    %c0_i32 = arith.constant 0 : i32
    %c0_i32_0 = arith.constant 0 : i32
    %c0_i32_1 = arith.constant 0 : i32
    return %c0_i32, %c0_i32_0 : i32, i32
  }
  func.func @transform_8(%arg0: i32) -> i32 {
    %c0_i32 = arith.constant 0 : i32
    %c0_i32_0 = arith.constant 0 : i32
    return %c0_i32 : i32
  }
}

</mosaic_0001>

<bundles_post_ra>
// kernel: tpu_custom_call.1
= control target key start
LH: loop header
LB: loop body
LE: loop exit
PB: predicated region body
PF: predicated region fallthrough
CT: control target
= control target key end

     0   :  { %v2821_v28 = vlaneseq  ;;  %v2138_v36 = vmov 1966171168   ;;  %s2812_s0 = inlined_call_operand.vmem [shape: bf16[2,1024], index: 0, kind: input, shape index: {}]   ;;  %s2813_s1 = inlined_call_operand.vmem [shape: bf16[2,1024], index: 1, kind: input, shape index: {}]   ;;  %s2814_s2 = inlined_call_operand.vmem [shape: bf16[1024,64], index: 2, kind: input, shape index: {}]   ;;  %s2815_s3 = inlined_call_operand.vmem [shape: f32[1,64], index: 3, kind: input, shape index: {}]   ;;  %s2816_s4 = inlined_call_operand.vmem [shape: bf16[64,64], index: 4, kind: input, shape index: {}]   ;;  %s2817_s5 = inlined_call_operand.vmem [shape: f32[1,64], index: 5, kind: input, shape index: {}]   ;;  %s2818_s6 = inlined_call_operand.vmem [shape: bf16[64,32], index: 6, kind: input, shape index: {}]   ;;  %s2819_s7 = inlined_call_operand.vmem [shape: f32[1,32], index: 7, kind: input, shape index: {}]   ;;  %s2820_s8 = inlined_call_operand.hbm [shape: f32[1], index: 8, kind: output, shape index: {}]  }
   0x1   :  { %v2190_v0 = vld [vmem:[%s2814_s2 + $0x78] sm:$0xff]   ;;  %v2213_v4 = vld [vmem:[%s2814_s2 + $0x70] sm:$0xff]   ;;  %v2237_v8 = vld [vmem:[%s2814_s2 + $0x68] sm:$0xff]   ;;  %v188_v37 = vunpack.c.l.s4 %v2138_v36 }
   0x2   :  { %v2195_v1 = vld [vmem:[%s2814_s2 + $0xf8] sm:$0xff]   ;;  %1756 = vmatprep.subr.bf16.mxu0 %v2190_v0  ;;  %v2219_v5 = vld [vmem:[%s2814_s2 + $0xf0] sm:$0xff]   ;;  %v2243_v9 = vld [vmem:[%s2814_s2 + $0xe8] sm:$0xff]   ;;  %v2378_v33 = vshrl.u32 %v2821_v28, 7 }
   0x3   :  { %v2201_v2 = vld [vmem:[%s2814_s2 + $0x38] sm:$0xff]   ;;  %1778 = vmatprep.subr.bf16.mxu1 %v2195_v1  ;;  %v2225_v6 = vld [vmem:[%s2814_s2 + $0x30] sm:$0xff]   ;;  %v2249_v10 = vld [vmem:[%s2814_s2 + $0x28] sm:$0xff]   ;;  %v189_v40 = vunpack.c.0.s8 %v188_v37 }
   0x4   :  { %v2207_v3 = vld [vmem:[%s2814_s2 + $0xb8] sm:$0xff]   ;;  %1757 = vmatpush3.bf16.msra.mxu0 %v2201_v2  ;;  %v2231_v7 = vld [vmem:[%s2814_s2 + $0xb0] sm:$0xff]   ;;  %v2255_v11 = vld [vmem:[%s2814_s2 + $0xa8] sm:$0xff]   ;;  %2860 = vst [vmem:[#allocation15_spill] sm:$0xff] %v2378_v33 }
   0x5   :  { %1779 = vmatpush3.bf16.msra.mxu1 %v2207_v3  ;;  %1758 = vmatprep.subr.bf16.mxu0 %v2213_v4  ;;  %v2261_v12 = vld [vmem:[%s2814_s2 + $0x60] sm:$0xff]   ;;  %v2285_v16 = vld [vmem:[%s2814_s2 + $0x58] sm:$0xff]   ;;  %v2309_v20 = vld [vmem:[%s2814_s2 + $0x50] sm:$0xff]   ;;  %v2398_v41 = vsub.s32 %v189_v40, %v2378_v33 }
   0x6   :  { %1780 = vmatprep.subr.bf16.mxu1 %v2219_v5  ;;  %v2267_v13 = vld [vmem:[%s2814_s2 + $0xe0] sm:$0xff]   ;;  %v2291_v17 = vld [vmem:[%s2814_s2 + $0xd8] sm:$0xff]   ;;  %v2315_v21 = vld [vmem:[%s2814_s2 + $0xd0] sm:$0xff]  }
   0x7   :  { %v2273_v14 = vld [vmem:[%s2814_s2 + $0x20] sm:$0xff]   ;;  %2852 = vst [vmem:[#allocation7_spill] sm:$0xff] %v2291_v17  ;;  %v2297_v18 = vld [vmem:[%s2814_s2 + $0x18] sm:$0xff]   ;;  %2854 = vst [vmem:[#allocation9_spill] sm:$0xff] %v2315_v21 }
   0x8   :  { %1759 = vmatpush3.bf16.msra.mxu0 %v2225_v6  ;;  %v2279_v15 = vld [vmem:[%s2814_s2 + $0xa0] sm:$0xff]   ;;  %v2303_v19 = vld [vmem:[%s2814_s2 + $0x98] sm:$0xff]   ;;  %v2321_v22 = vld [vmem:[%s2814_s2 + $0x10] sm:$0xff]  }
   0x9   :  { %1781 = vmatpush3.bf16.msra.mxu1 %v2231_v7  ;;  %1760 = vmatprep.subr.bf16.mxu0 %v2237_v8  ;;  %2853 = vst [vmem:[#allocation8_spill] sm:$0xff] %v2303_v19  ;;  %v2327_v23 = vld [vmem:[%s2814_s2 + $0x90] sm:$0xff]   ;;  %v2333_v24 = vld [vmem:[%s2814_s2 + $0x48] sm:$0xff]   ;;  %v2357_v29 = vld [vmem:[%s2814_s2 + $0x40] sm:$0xff]  }
   0xa   :  { %1782 = vmatprep.subr.bf16.mxu1 %v2243_v9  ;;  %2855 = vst [vmem:[#allocation10_spill] sm:$0xff] %v2327_v23  ;;  %v2339_v25 = vld [vmem:[%s2814_s2 + $0xc8] sm:$0xff]   ;;  %v2363_v30 = vld [vmem:[%s2814_s2 + $0xc0] sm:$0xff]   ;;  %v2387_v35 = vld [vmem:[%s2814_s2 + $0x178] sm:$0xff]  }
   0xb   :  { %2856 = vst [vmem:[#allocation11_spill] sm:$0xff] %v2339_v25  ;;  %v2345_v26 = vld [vmem:[%s2814_s2 + $0x8] sm:$0xff]   ;;  %2858 = vst [vmem:[#allocation13_spill] sm:$0xff] %v2363_v30  ;;  %v2369_v31 = vld [vmem:[%s2814_s2] sm:$0xff]  }
   0xc   :  { %1761 = vmatpush3.bf16.msra.mxu0 %v2249_v10  ;;  %v2351_v27 = vld [vmem:[%s2814_s2 + $0x88] sm:$0xff]   ;;  %v2375_v32 = vld [vmem:[%s2814_s2 + $0x80] sm:$0xff]   ;;  %v2394_v38 = vld [vmem:[%s2814_s2 + $0x1f8] sm:$0xff]  }
   0xd   :  { %1783 = vmatpush3.bf16.msra.mxu1 %v2255_v11  ;;  %1762 = vmatprep.subr.bf16.mxu0 %v2261_v12  ;;  %2857 = vst [vmem:[#allocation12_spill] sm:$0xff] %v2351_v27  ;;  %2859 = vst [vmem:[#allocation14_spill] sm:$0xff] %v2375_v32  ;;  %v178_v34 = vld [vmem:[%s2812_s0] sm:$0xff]  ;;  %v2410_v47 = vld [vmem:[%s2814_s2 + $0x138] sm:$0xff]  }
   0xe   :  { %1784 = vmatprep.subr.bf16.mxu1 %v2267_v13  ;;  %2861 = vst [vmem:[#allocation16_spill] sm:$0xff] %v2394_v38  ;;  %v186_v39 = vcombine.high %v178_v34, %v178_v34  ;;  %v193_v42 = vrot.slane %v178_v34, %v2398_v41  ;;  %v2416_v49 = vld [vmem:[%s2814_s2 + $0x1b8] sm:$0xff]   ;;  %v2422_v52 = vld [vmem:[%s2814_s2 + $0x170] sm:$0xff]   ;;  %v2444_v58 = vld [vmem:[%s2814_s2 + $0x168] sm:$0xff]  }
   0xf   :  { %2862 = vst [vmem:[#allocation17_spill] sm:$0xff] %v2416_v49  ;;  %v2427_v54 = vld [vmem:[%s2814_s2 + $0x1f0] sm:$0xff]   ;;  %v2450_v59 = vld [vmem:[%s2814_s2 + $0x1e8] sm:$0xff]   ;;  %v2468_v62 = vld [vmem:[%s2814_s2 + $0x160] sm:$0xff]  }
  0x10   :  { %1763 = vmatpush3.bf16.msra.mxu0 %v2273_v14  ;;  %v2402_v43 = vrot.slane %v186_v39, %v2398_v41  ;;  %v201_v44 = vcombine.high %v193_v42, %v193_v42  ;;  %v209_v45 = vrot.slane %v193_v42, %v2398_v41  ;;  %2863 = vst [vmem:[#allocation18_spill] sm:$0xff] %v2427_v54  ;;  %v2432_v55 = vld [vmem:[%s2814_s2 + $0x130] sm:$0xff]   ;;  %2865 = vst [vmem:[#allocation20_spill] sm:$0xff] %v2450_v59  ;;  %v2456_v60 = vld [vmem:[%s2814_s2 + $0x128] sm:$0xff]  }
  0x11   :  { %1785 = vmatpush3.bf16.msra.mxu1 %v2279_v15  ;;  %1764 = vmatprep.subr.bf16.mxu0 %v2285_v16  ;;  %v2438_v57 = vld [vmem:[%s2814_s2 + $0x1b0] sm:$0xff]   ;;  %v2462_v61 = vld [vmem:[%s2814_s2 + $0x1a8] sm:$0xff]   ;;  %v2474_v63 = vld [vmem:[%s2814_s2 + $0x1e0] sm:$0xff]  }
  0x12   :  { %1786 = vmatprep.subr.bf16.mxu1 %v2291_v17  ;;  %v202_v46 = vcombine.high %v2402_v43, %v2402_v43  ;;  %v223_v48 = vrot.slane %v201_v44, %v2398_v41  ;;  %v231_v51 = vcombine.high %v209_v45, %v209_v45  ;;  %2864 = vst [vmem:[#allocation19_spill] sm:$0xff] %v2438_v57  ;;  %2866 = vst [vmem:[#allocation21_spill] sm:$0xff] %v2462_v61  ;;  %v2480_v34 = vld [vmem:[%s2814_s2 + $0x120] sm:$0xff]   ;;  %v2492_v37 = vld [vmem:[%s2814_s2 + $0x158] sm:$0xff]  }
  0x13   :  { %2867 = vst [vmem:[#allocation22_spill] sm:$0xff] %v2474_v63  ;;  %v2486_v36 = vld [vmem:[%s2814_s2 + $0x1a0] sm:$0xff]   ;;  %v2498_v39 = vld [vmem:[%s2814_s2 + $0x1d8] sm:$0xff]   ;;  %v2516_v44 = vld [vmem:[%s2814_s2 + $0x150] sm:$0xff]  }
  0x14   :  { %1765 = vmatpush3.bf16.msra.mxu0 %v2297_v18  ;;  %v230_v50 = vrot.slane %v202_v46, %v2398_v41  ;;  %659 = vmatprep.mubr.bf16.mxu0 %v223_v48  ;;  %v233_v53 = vcombine.high %v223_v48, %v223_v48  ;;  %2868 = vst [vmem:[#allocation23_spill] sm:$0xff] %v2486_v36  ;;  %2869 = vst [vmem:[#allocation24_spill] sm:$0xff] %v2498_v39  ;;  %v2504_v40 = vld [vmem:[%s2814_s2 + $0x118] sm:$0xff]   ;;  %v2528_v46 = vld [vmem:[%s2814_s2 + $0x110] sm:$0xff]  }
  0x15   :  { %1787 = vmatpush3.bf16.msra.mxu1 %v2303_v19  ;;  %1766 = vmatprep.subr.bf16.mxu0 %v2309_v20  ;;  %v2510_v42 = vld [vmem:[%s2814_s2 + $0x198] sm:$0xff]   ;;  %v2534_v48 = vld [vmem:[%s2814_s2 + $0x190] sm:$0xff]   ;;  %v2563_v28 = vld [vmem:[%s2814_s2 + $0x188] sm:$0xff]  }
  0x16   :  { %1788 = vmatprep.subr.bf16.mxu1 %v2315_v21  ;;  %v234_v56 = vcombine.high %v230_v50, %v230_v50  ;;  %699 = vmatprep.mubr.bf16.mxu1 %v233_v53  ;;  %2870 = vst [vmem:[#allocation25_spill] sm:$0xff] %v2510_v42  ;;  %2872 = vst [vmem:[#allocation27_spill] sm:$0xff] %v2534_v48  ;;  %v2551_v53 = vld [vmem:[%s2814_s2 + $0x108] sm:$0xff]  }
  0x17   :  { %2874 = vst [vmem:[#allocation29_spill] sm:$0xff] %v2563_v28 }
  0x18   :  { %1767 = vmatpush3.bf16.msra.mxu0 %v2321_v22 }
  0x19   :  { %1789 = vmatpush3.bf16.msra.mxu1 %v2327_v23  ;;  %1768 = vmatprep.subr.bf16.mxu0 %v2333_v24 }
  0x1a   :  { %1790 = vmatprep.subr.bf16.mxu1 %v2339_v25 }
  0x1c   :  { %1769 = vmatpush3.bf16.msra.mxu0 %v2345_v26 }
  0x1d   :  { %1791 = vmatpush3.bf16.msra.mxu1 %v2351_v27  ;;  %1770 = vmatprep.subr.bf16.mxu0 %v2357_v29 }
  0x1e   :  { %1792 = vmatprep.subr.bf16.mxu1 %v2363_v30 }
  0x20   :  { %1771 = vmatpush3.bf16.msra.mxu0 %v2369_v31 }
  0x21   :  { %1793 = vmatpush3.bf16.msra.mxu1 %v2375_v32  ;;  %1800 = vmatprep.subr.bf16.mxu0 %v2387_v35 }
  0x22   :  { %1822 = vmatprep.subr.bf16.mxu1 %v2394_v38 }
  0x23   :  { %660 = vmatmul.mubr.bf16.vlgmr.msra.gmra.mxu0 %v209_v45  ;;  %v2522_v45 = vld [vmem:[%s2814_s2 + $0x1d0] sm:$0xff]  }
  0x24   :  { %1801 = vmatpush3.bf16.msra.mxu0 %v2410_v47  ;;  %700 = vmatmul.mubr.bf16.vlgmr.msra.gmra.mxu1 %v231_v51  ;;  %2871 = vst [vmem:[#allocation26_spill] sm:$0xff] %v2522_v45  ;;  %v2545_v51 = vld [vmem:[%s2814_s2 + $0x1c8] sm:$0xff]  }
  0x25   :  { %1802 = vmatprep.subr.bf16.mxu0 %v2422_v52  ;;  %1823 = vmatpush3.bf16.msra.mxu1 %v2416_v49  ;;  %2873 = vst [vmem:[#allocation28_spill] sm:$0xff] %v2545_v51 }
  0x26   :  { %739 = vmatprep.mubr.bf16.mxu0 %v230_v50  ;;  %1824 = vmatprep.subr.bf16.mxu1 %v2427_v54  ;;  %v2539_v50 = vld [vmem:[%s2814_s2 + $0x148] sm:$0xff]  }
  0x27   :  { %779 = vmatprep.mubr.bf16.mxu1 %v234_v56  ;;  %v2557_v56 = vld [vmem:[%s2814_s2 + $0x140] sm:$0xff]  }
  0x28   :  { %1803 = vmatpush3.bf16.msra.mxu0 %v2432_v55 }
  0x29   :  { %1804 = vmatprep.subr.bf16.mxu0 %v2444_v58  ;;  %1825 = vmatpush3.bf16.msra.mxu1 %v2438_v57 }
  0x2a   :  { %1826 = vmatprep.subr.bf16.mxu1 %v2450_v59 }
  0x2c   :  { %1805 = vmatpush3.bf16.msra.mxu0 %v2456_v60 }
  0x2d   :  { %1806 = vmatprep.subr.bf16.mxu0 %v2468_v62  ;;  %1827 = vmatpush3.bf16.msra.mxu1 %v2462_v61 }
  0x2e   :  { %1828 = vmatprep.subr.bf16.mxu1 %v2474_v63 }
  0x30   :  { %1807 = vmatpush3.bf16.msra.mxu0 %v2480_v34 }
  0x31   :  { %1808 = vmatprep.subr.bf16.mxu0 %v2492_v37  ;;  %1829 = vmatpush3.bf16.msra.mxu1 %v2486_v36 }
  0x32   :  { %1830 = vmatprep.subr.bf16.mxu1 %v2498_v39 }
  0x34   :  { %1809 = vmatpush3.bf16.msra.mxu0 %v2504_v40 }
  0x35   :  { %1810 = vmatprep.subr.bf16.mxu0 %v2516_v44  ;;  %1831 = vmatpush3.bf16.msra.mxu1 %v2510_v42 }
  0x36   :  { %1832 = vmatprep.subr.bf16.mxu1 %v2522_v45 }
  0x38   :  { %1811 = vmatpush3.bf16.msra.mxu0 %v2528_v46 }
  0x39   :  { %1812 = vmatprep.subr.bf16.mxu0 %v2539_v50  ;;  %1833 = vmatpush3.bf16.msra.mxu1 %v2534_v48 }
  0x3a   :  { %13 = vsyncpa [#allocation5], 0  ;;  %1834 = vmatprep.subr.bf16.mxu1 %v2545_v51  ;;  %v2571_v33 = vld [vmem:[%s2814_s2 + $0x1c0] sm:$0xff]   ;;  %v216_v48 = vrot.slane %v2402_v43, %v2398_v41  ;;  %v2594_v43 = vld [vmem:[%s2816_s4 + $0x18] sm:$0xff]   ;;  %vm2140_vm0 = vmmov 0   ;;  %vm818_vm1 = vcmask 523264  }
  0x3b   :  { %2875 = vst [vmem:[#allocation30_spill] sm:$0xff] %v2571_v33  ;;  %v2577_v45 = vld [vmem:[%s2814_s2 + $0x100] sm:$0xff]   ;;  %v2635_v39 = vld [vmem:[%s2818_s6 + $0x10] sm:$0xff]   ;;  %vm1246_vm2 = vcmask 254976   ;;  %vm1269_vm3 = vcmask 261120   ;;  %vm1580_vm5 = vcmask 9216  }
  0x3c   :  { %1813 = vmatpush3.bf16.msra.mxu0 %v2551_v53  ;;  %v2586_v51 = vld [vmem:[%s2814_s2 + $0x180] sm:$0xff]   ;;  %v232_v42 = vcombine.high %v216_v48, %v216_v48  ;;  %2878 = vst [vmem:[#allocation33_spill] sm:$0xff] %v2635_v39  ;;  %vm1602_vm6 = vcmask 1024   ;;  %s2141_s26 = smov [#allocation4]  }
  0x3d   :  { %1814 = vmatprep.subr.bf16.mxu0 %v2557_v56  ;;  %1835 = vmatpush3.bf16.msra.mxu1 %v2563_v28  ;;  %2876 = vst [vmem:[#allocation31_spill] sm:$0xff] %v2586_v51  ;;  %v2845_v28 = vmov 0.0   ;;  %v2649_v38 = vld [vmem:[%s2815_s3] ss:$0 sm:$0xff] }
  0x3e   :  { %1836 = vmatprep.subr.bf16.mxu1 %v2571_v33  ;;  %v2628_v33 = vld [vmem:[%s2818_s6 + $0x18] sm:$0xff]  }
  0x3f   :  { %2877 = vst [vmem:[#allocation32_spill] sm:$0xff] %v2628_v33 }
  0x40   :  { %1815 = vmatpush3.bf16.msra.mxu0 %v2577_v45 }
  0x41   :  { %1837 = vmatpush3.bf16.msra.mxu1 %v2586_v51  ;;  %1960 = vmatprep.subr.bf16.mxu0 %v2845_v28  ;;  %v2603_v51 = vld [vmem:[%s2816_s4 + $0x10] sm:$0xff]  }
  0x42   :  { %1972 = vmatprep.subr.bf16.mxu1 %v2845_v28 }
  0x43   :  { %740 = vmatmul.mubr.bf16.vlgmr.msra.gmra.mxu0 %v216_v48  ;;  %v2617_v48 = vld [vmem:[%s2816_s4] sm:$0xff]  }
  0x44   :  { %780 = vmatmul.mubr.bf16.vlgmr.msra.gmra.mxu1 %v232_v42  ;;  %1961 = vmatpush3.bf16.msra.mxu0 %v2594_v43  ;;  %v2610_v42 = vld [vmem:[%s2816_s4 + $0x8] sm:$0xff]  }
  0x45   :  { %1962 = vmatprep.subr.bf16.mxu0 %v2845_v28  ;;  %1968 = vmatprep.mubr.msk.bf16.mxu0 %vm2140_vm0, %v2845_v28 }
  0x46   :  { %1980 = vmatprep.mubr.msk.bf16.mxu1 %vm2140_vm0, %v2845_v28  ;;  %1973 = vmatpush3.bf16.msra.mxu1 %v2628_v33 }
  0x47   :  { %1974 = vmatprep.subr.bf16.mxu1 %v2845_v28 }
  0x48   :  { %1963 = vmatpush3.bf16.msra.mxu0 %v2603_v51 }
  0x49   :  { %1964 = vmatprep.subr.bf16.mxu0 %v2845_v28 }
  0x4a   :  { %1975 = vmatpush3.bf16.msra.mxu1 %v2635_v39 }
  0x4b   :  { %1976 = vmatprep.subr.bf16.mxu1 %v2845_v28 }
  0x4c   :  { %1965 = vmatpush3.bf16.msra.mxu0 %v2610_v42 }
  0x4d   :  { %1966 = vmatprep.subr.bf16.mxu0 %v2845_v28 }
  0x50   :  { %1967 = vmatpush3.bf16.msra.mxu0 %v2617_v48 }
  0x51   :  { %1854 = vmatprep.subr.bf16.mxu0 %v2190_v0  ;;  %v2642_v0 = vld [vmem:[%s2818_s6 + $0x8] sm:$0xff]  }
  0x52   :  { %2879 = vst [vmem:[#allocation34_spill] sm:$0xff] %v2642_v0  ;;  %1977 = vmatpush3.bf16.msra.mxu1 %v2642_v0 }
  0x53   :  { %1978 = vmatprep.subr.bf16.mxu1 %v2845_v28 }
  0xe3   :  { %v1772_v33 = vpop.f32.mrf.mxu0 }
  0xe4   :  { %v1794_v36 = vpop.f32.mrf.mxu1 }
  0xe5   :  { %v1773_v63 = vpop.f32.mrf.mxu0 }
  0xe6   :  { %v1795_v61 = vpop.f32.mrf.mxu1  ;;  %v1774_v39 = vadd.f32 %v1773_v63, %v1772_v33 }
  0xe7   :  { %v1775_v59 = vpop.f32.mrf.mxu0  ;;  %v1796_v30 = vadd.f32 %v1795_v61, %v1794_v36  ;;  %v2897_v61 = vld [vmem:[#allocation24_spill] sm:$0xff]  ;;  %v2900_v36 = vld [vmem:[#allocation27_spill] sm:$0xff] }
  0xe8   :  { %v1797_v57 = vpop.f32.mrf.mxu1  ;;  %v662_v32 = vadd.f32 %v1774_v39, %v2649_v38  ;;  %v2902_v39 = vld [vmem:[#allocation29_spill] sm:$0xff] }
  0xe9   :  { %v1776_v54 = vpop.f32.mrf.mxu0 }
  0xea   :  { %v1798_v49 = vpop.f32.mrf.mxu1  ;;  %v702_v25 = vadd.f32 %v1796_v30, %v662_v32  ;;  %v2882_v30 = vld [vmem:[#allocation8_spill] sm:$0xff]  ;;  %v2885_v32 = vld [vmem:[#allocation11_spill] sm:$0xff] }
 0x103   :  { %v1816_v0 = vpop.f32.mrf.mxu0 }
 0x104   :  { %v1838_v27 = vpop.f32.mrf.mxu1 }
 0x105   :  { %v1817_v28 = vpop.f32.mrf.mxu0 }
 0x106   :  { %v1818_v23 = vadd.f32 %v1817_v28, %v1816_v0  ;;  %v1839_v21 = vpop.f32.mrf.mxu1 }
 0x107   :  { %v1819_v19 = vpop.f32.mrf.mxu0  ;;  %v1840_v57 = vadd.f32 %v1839_v21, %v1838_v27 }
 0x108   :  { %v742_v59 = vadd.f32 %v1818_v23, %v702_v25  ;;  %v1841_v54 = vpop.f32.mrf.mxu1  ;;  %v2880_v19 = vmov 0.0  }
 0x109   :  { %v1820_v49 = vpop.f32.mrf.mxu0 }
 0x10a   :  { %v782_v33 = vadd.f32 %v1840_v57, %v742_v59  ;;  %v1842_v63 = vpop.f32.mrf.mxu1 }
 0x10c   :  { %v787_v17 = vpack.c.bf16 %v782_v33, %v782_v33  ;;  %v1735_v33 = vld [vmem:[%s2819_s7] ss:$0 sm:$0xff] }
 0x10e   :  { %1969 = vmatmul.mubr.msk.bf16.vlgmr.msra.gmra.mxu0 %vm818_vm1, %v787_v17 }
 0x10f   :  { %1855 = vmatpush3.bf16.msra.mxu0 %v2201_v2  ;;  %v2672_v2 = vld [vmem:[%s2818_s6] sm:$0xff]  }
 0x110   :  { %1856 = vmatprep.subr.bf16.mxu0 %v2213_v4  ;;  %v937_v4 = vld [vmem:[%s2813_s1] sm:$0xff]  ;;  %1979 = vmatpush3.bf16.msra.mxu1 %v2672_v2 }
 0x111   :  { %1876 = vmatprep.subr.bf16.mxu1 %v2195_v1  ;;  %v939_v1 = vcombine.high %v937_v4, %v937_v4 }
 0x113   :  { %1857 = vmatpush3.bf16.msra.mxu0 %v2225_v6  ;;  %v946_v6 = vrot.slane %v937_v4, %v2398_v41 }
 0x114   :  { %1858 = vmatprep.subr.bf16.mxu0 %v2237_v8 }
 0x115   :  { %v954_v8 = vcombine.high %v946_v6, %v946_v6 }
 0x117   :  { %1859 = vmatpush3.bf16.msra.mxu0 %v2249_v10  ;;  %v976_v10 = vrot.slane %v954_v8, %v2398_v41 }
 0x118   :  { %1860 = vmatprep.subr.bf16.mxu0 %v2261_v12  ;;  %v2682_v12 = vrot.slane %v946_v6, %v2398_v41 }
 0x119   :  { %1028 = vmatprep.mubr.bf16.mxu0 %v976_v10 }
 0x11b   :  { %1861 = vmatpush3.bf16.msra.mxu0 %v2273_v14  ;;  %v953_v14 = vrot.slane %v939_v1, %v2398_v41 }
 0x11c   :  { %1862 = vmatprep.subr.bf16.mxu0 %v2285_v16 }
 0x11d   :  { %v955_v16 = vcombine.high %v953_v14, %v953_v14 }
 0x11f   :  { %1863 = vmatpush3.bf16.msra.mxu0 %v2297_v18  ;;  %v983_v17 = vrot.slane %v955_v16, %v2398_v41  ;;  %v969_v18 = vrot.slane %v953_v14, %v2398_v41  ;;  %v2891_v41 = vld [vmem:[#allocation18_spill] sm:$0xff] }
 0x120   :  { %1864 = vmatprep.subr.bf16.mxu0 %v2309_v20  ;;  %v2717_v20 = vld [vmem:[%s2817_s5] ss:$0 sm:$0xff] }
 0x123   :  { %1865 = vmatpush3.bf16.msra.mxu0 %v2321_v22 }
 0x124   :  { %1866 = vmatprep.subr.bf16.mxu0 %v2333_v24 }
 0x127   :  { %1867 = vmatpush3.bf16.msra.mxu0 %v2345_v26  ;;  %v986_v26 = vcombine.high %v976_v10, %v976_v10 }
 0x128   :  { %1868 = vmatprep.subr.bf16.mxu0 %v2357_v29  ;;  %v2881_v29 = vld [vmem:[#allocation7_spill] sm:$0xff] }
 0x12b   :  { %1869 = vmatpush3.bf16.msra.mxu0 %v2369_v31  ;;  %v2883_v31 = vld [vmem:[#allocation9_spill] sm:$0xff] }
 0x12c   :  { %1898 = vmatprep.subr.bf16.mxu0 %v2387_v35  ;;  %v2890_v35 = vld [vmem:[#allocation17_spill] sm:$0xff] }
 0x12e   :  { %1029 = vmatmul.mubr.bf16.vlgmr.msra.gmra.mxu0 %v2682_v12 }
 0x12f   :  { %1899 = vmatpush3.bf16.msra.mxu0 %v2410_v47  ;;  %1108 = vmatprep.mubr.bf16.mxu0 %v983_v17  ;;  %v2892_v47 = vld [vmem:[#allocation19_spill] sm:$0xff] }
 0x130   :  { %1900 = vmatprep.subr.bf16.mxu0 %v2422_v52  ;;  %v2893_v52 = vld [vmem:[#allocation20_spill] sm:$0xff] }
 0x133   :  { %1901 = vmatpush3.bf16.msra.mxu0 %v2432_v55  ;;  %v2894_v55 = vld [vmem:[#allocation21_spill] sm:$0xff] }
 0x134   :  { %1902 = vmatprep.subr.bf16.mxu0 %v2444_v58  ;;  %v2895_v58 = vld [vmem:[#allocation22_spill] sm:$0xff] }
 0x137   :  { %1903 = vmatpush3.bf16.msra.mxu0 %v2456_v60  ;;  %v2896_v60 = vld [vmem:[#allocation23_spill] sm:$0xff] }
 0x138   :  { %1904 = vmatprep.subr.bf16.mxu0 %v2468_v62  ;;  %v2898_v62 = vld [vmem:[#allocation25_spill] sm:$0xff] }
 0x13b   :  { %1905 = vmatpush3.bf16.msra.mxu0 %v2480_v34  ;;  %v2899_v34 = vld [vmem:[#allocation26_spill] sm:$0xff] }
 0x13c   :  { %1906 = vmatprep.subr.bf16.mxu0 %v2492_v37  ;;  %v2901_v37 = vld [vmem:[#allocation28_spill] sm:$0xff] }
 0x13f   :  { %1907 = vmatpush3.bf16.msra.mxu0 %v2504_v40  ;;  %v2903_v40 = vld [vmem:[#allocation30_spill] sm:$0xff] }
 0x140   :  { %1908 = vmatprep.subr.bf16.mxu0 %v2516_v44  ;;  %v985_v44 = vcombine.high %v969_v18, %v969_v18 }
 0x143   :  { %1909 = vmatpush3.bf16.msra.mxu0 %v2528_v46  ;;  %v2905_v46 = vld [vmem:[#allocation32_spill] sm:$0xff] }
 0x144   :  { %1910 = vmatprep.subr.bf16.mxu0 %v2539_v50  ;;  %v2906_v50 = vld [vmem:[#allocation33_spill] sm:$0xff] }
 0x147   :  { %1911 = vmatpush3.bf16.msra.mxu0 %v2551_v53 }
 0x148   :  { %1912 = vmatprep.subr.bf16.mxu0 %v2557_v56 }
 0x14b   :  { %1913 = vmatpush3.bf16.msra.mxu0 %v2577_v45  ;;  %v2904_v45 = vld [vmem:[#allocation31_spill] sm:$0xff] }
 0x14c   :  { %1984 = vmatprep.subr.bf16.mxu0 %v2880_v19 }
 0x14e   :  { %1109 = vmatmul.mubr.bf16.vlgmr.msra.gmra.mxu0 %v969_v18 }
 0x14f   :  { %1985 = vmatpush3.bf16.msra.mxu0 %v2594_v43  ;;  %1992 = vmatprep.mubr.msk.bf16.mxu0 %vm2140_vm0, %v2880_v19  ;;  %v2907_v43 = vld [vmem:[#allocation34_spill] sm:$0xff] }
 0x150   :  { %1986 = vmatprep.subr.bf16.mxu0 %v2880_v19 }
 0x153   :  { %1987 = vmatpush3.bf16.msra.mxu0 %v2603_v51 }
 0x154   :  { %1988 = vmatprep.subr.bf16.mxu0 %v2880_v19 }
 0x157   :  { %1989 = vmatpush3.bf16.msra.mxu0 %v2610_v42 }
 0x158   :  { %1990 = vmatprep.subr.bf16.mxu0 %v2880_v19 }
 0x15b   :  { %1991 = vmatpush3.bf16.msra.mxu0 %v2617_v48 }
 0x15c   :  { %2008 = vmatprep.subr.mxu0 %v2880_v19 }
 0x1ce   :  { %v856_v21 = vpop.f32.mrf.mxu0 }
 0x1cf   :  { %v857_v22 = vadd.f32 %v2717_v20, %v856_v21 }
 0x1d0   :  { %v1970_v23 = vpop.f32.mrf.mxu0 }
 0x1d1   :  { %v862_v24 = vmax.f32 %v857_v22, 0.0 }
 0x1d2   :  { %v859_v25 = vpop.f32.mrf.mxu0 }
 0x1d3   :  { %v863_v27 = vpack.c.bf16 %v862_v24, %v862_v24 }
 0x1d4   :  { %v1971_v28 = vpop.f32.mrf.mxu0 }
 0x1d5   :  { %1981 = vmatmul.mubr.msk.bf16.vlgmr.msra.gmra.mxu1 %vm818_vm1, %v863_v27 }
 0x1d6   :  { %1877 = vmatpush3.bf16.msra.mxu1 %v2207_v3  ;;  %1068 = vmatprep.mubr.bf16.mxu1 %v986_v26  ;;  %v2884_v3 = vld [vmem:[#allocation10_spill] sm:$0xff] }
 0x1d7   :  { %1878 = vmatprep.subr.bf16.mxu1 %v2219_v5  ;;  %v2886_v5 = vld [vmem:[#allocation12_spill] sm:$0xff] }
 0x1da   :  { %1879 = vmatpush3.bf16.msra.mxu1 %v2231_v7  ;;  %v2887_v7 = vld [vmem:[#allocation13_spill] sm:$0xff] }
 0x1db   :  { %1880 = vmatprep.subr.bf16.mxu1 %v2243_v9  ;;  %v984_v9 = vcombine.high %v2682_v12, %v2682_v12 }
 0x1de   :  { %1881 = vmatpush3.bf16.msra.mxu1 %v2255_v11  ;;  %v2888_v11 = vld [vmem:[#allocation14_spill] sm:$0xff] }
 0x1df   :  { %1882 = vmatprep.subr.bf16.mxu1 %v2267_v13  ;;  %v987_v13 = vcombine.high %v983_v17, %v983_v17 }
 0x1e2   :  { %1883 = vmatpush3.bf16.msra.mxu1 %v2279_v15  ;;  %v2889_v15 = vld [vmem:[#allocation16_spill] sm:$0xff] }
 0x1e3   :  { %1884 = vmatprep.subr.bf16.mxu1 %v2881_v29 }
 0x1e6   :  { %1885 = vmatpush3.bf16.msra.mxu1 %v2882_v30 }
 0x1e7   :  { %1886 = vmatprep.subr.bf16.mxu1 %v2883_v31 }
 0x1ea   :  { %1887 = vmatpush3.bf16.msra.mxu1 %v2884_v3 }
 0x1eb   :  { %1888 = vmatprep.subr.bf16.mxu1 %v2885_v32 }
 0x1ee   :  { %1889 = vmatpush3.bf16.msra.mxu1 %v2886_v5  ;;  %v1870_v51 = vpop.f32.mrf.mxu0 }
 0x1ef   :  { %1890 = vmatprep.subr.bf16.mxu1 %v2887_v7 }
 0x1f0   :  { %v1871_v53 = vpop.f32.mrf.mxu0 }
 0x1f1   :  { %v1872_v56 = vadd.f32 %v1871_v53, %v1870_v51 }
 0x1f2   :  { %1891 = vmatpush3.bf16.msra.mxu1 %v2888_v11  ;;  %v1873_v42 = vpop.f32.mrf.mxu0 }
 0x1f3   :  { %1920 = vmatprep.subr.bf16.mxu1 %v2889_v15  ;;  %v1031_v14 = vadd.f32 %v1872_v56, %v2649_v38 }
 0x1f4   :  { %v1874_v48 = vpop.f32.mrf.mxu0 }
 0x1f5   :  { %1069 = vmatmul.mubr.bf16.vlgmr.msra.gmra.mxu1 %v984_v9 }
 0x1f6   :  { %1921 = vmatpush3.bf16.msra.mxu1 %v2890_v35  ;;  %1148 = vmatprep.mubr.bf16.mxu1 %v987_v13 }
 0x1f7   :  { %1922 = vmatprep.subr.bf16.mxu1 %v2891_v41 }
 0x1fa   :  { %1923 = vmatpush3.bf16.msra.mxu1 %v2892_v47 }
 0x1fb   :  { %1924 = vmatprep.subr.bf16.mxu1 %v2893_v52 }
 0x1fe   :  { %1925 = vmatpush3.bf16.msra.mxu1 %v2894_v55 }
 0x1ff   :  { %1926 = vmatprep.subr.bf16.mxu1 %v2895_v58 }
 0x202   :  { %1927 = vmatpush3.bf16.msra.mxu1 %v2896_v60  ;;  %v2908_v60 = vlaneseq }
 0x203   :  { %1928 = vmatprep.subr.bf16.mxu1 %v2897_v61 }
 0x204   :  { %v1575_v61 = vand.u32 127, %v2908_v60 }
 0x206   :  { %1929 = vmatpush3.bf16.msra.mxu1 %v2898_v62  ;;  %v2909_v62 = vld [vmem:[#allocation15_spill] sm:$0xff] }
 0x207   :  { %1930 = vmatprep.subr.bf16.mxu1 %v2899_v34  ;;  %vm1576_vm4 = vcmp.ne.s32.totalorder %v2909_v62, %v1575_v61 }
 0x20a   :  { %1931 = vmatpush3.bf16.msra.mxu1 %v2900_v36 }
 0x20b   :  { %1932 = vmatprep.subr.bf16.mxu1 %v2901_v37 }
 0x20e   :  { %1933 = vmatpush3.bf16.msra.mxu1 %v2902_v39  ;;  %v1914_v0 = vpop.f32.mrf.mxu0 }
 0x20f   :  { %1934 = vmatprep.subr.bf16.mxu1 %v2903_v40 }
 0x210   :  { %v1915_v59 = vpop.f32.mrf.mxu0 }
 0x211   :  { %v1916_v57 = vadd.f32 %v1915_v59, %v1914_v0 }
 0x212   :  { %1935 = vmatpush3.bf16.msra.mxu1 %v2904_v45  ;;  %v1917_v54 = vpop.f32.mrf.mxu0 }
 0x213   :  { %1996 = vmatprep.subr.bf16.mxu1 %v2880_v19 }
 0x214   :  { %v1918_v49 = vpop.f32.mrf.mxu0 }
 0x215   :  { %1149 = vmatmul.mubr.bf16.vlgmr.msra.gmra.mxu1 %v985_v44 }
 0x216   :  { %1997 = vmatpush3.bf16.msra.mxu1 %v2905_v46  ;;  %2004 = vmatprep.mubr.msk.bf16.mxu1 %vm2140_vm0, %v2880_v19 }
 0x217   :  { %1998 = vmatprep.subr.bf16.mxu1 %v2880_v19 }
 0x21a   :  { %1999 = vmatpush3.bf16.msra.mxu1 %v2906_v50 }
 0x21b   :  { %2000 = vmatprep.subr.bf16.mxu1 %v2880_v19 }
 0x21e   :  { %2001 = vmatpush3.bf16.msra.mxu1 %v2907_v43 }
 0x21f   :  { %2002 = vmatprep.subr.bf16.mxu1 %v2880_v19 }
 0x222   :  { %2003 = vmatpush3.bf16.msra.mxu1 %v2672_v2 }
 0x223   :  { %2013 = vmatprep.subr.mxu1 %v2880_v19 }
 0x295   :  { %v931_v63 = vpop.f32.mrf.mxu1 }
 0x296   :  { %v932_v4 = vadd.f32 %v1735_v33, %v931_v63 }
 0x297   :  { %v1982_v6 = vpop.f32.mrf.mxu1 }
 0x298   :  { %v1245_v8 = vmul.f32 %v932_v4, %v932_v4 }
 0x299   :  { %v934_v10 = vpop.f32.mrf.mxu1 }
 0x29a   :  { %v1247_v12 = vsel %vm1246_vm2, %v1245_v8, 0.0 }
 0x29b   :  { %1248 = vadd.xlane.f32.xlu0 %v1247_v12  ;;  %v1983_v2 = vpop.f32.mrf.mxu1 }
 0x2b5   :  { %v1892_v1 = vpop.f32.mrf.mxu1 }
 0x2b7   :  { %v1893_v16 = vpop.f32.mrf.mxu1 }
 0x2b8   :  { %v1894_v17 = vadd.f32 %v1893_v16, %v1892_v1 }
 0x2b9   :  { %v1895_v18 = vpop.f32.mrf.mxu1 }
 0x2ba   :  { %v1071_v21 = vadd.f32 %v1894_v17, %v1031_v14 }
 0x2bb   :  { %v1896_v22 = vpop.f32.mrf.mxu1 }
 0x2bc   :  { %v1111_v23 = vadd.f32 %v1916_v57, %v1071_v21 }
 0x2d5   :  { %v1936_v24 = vpop.f32.mrf.mxu1 }
 0x2d7   :  { %v1937_v25 = vpop.f32.mrf.mxu1 }
 0x2d8   :  { %v1938_v26 = vadd.f32 %v1937_v25, %v1936_v24 }
 0x2d9   :  { %v1939_v27 = vpop.f32.mrf.mxu1 }
 0x2da   :  { %v1151_v28 = vadd.f32 %v1938_v26, %v1111_v23 }
 0x2db   :  { %v1940_v29 = vpop.f32.mrf.mxu1 }
 0x2dc   :  { %v1156_v30 = vpack.c.bf16 %v1151_v28, %v1151_v28 }
 0x2de   :  { %1993 = vmatmul.mubr.msk.bf16.vlgmr.msra.gmra.mxu0 %vm818_vm1, %v1156_v30 }
 0x2df   :  { %2010 = vmatprep.mubr.msk.f32.mxu0 %vm2140_vm0, %v2880_v19 }
 0x324   :  { %v1249_v31 = vpop.xlane.xlu0 %1248 }
 0x325   :  { %2112 = vrsqrt.f32 %v1249_v31 }
 0x332   :  { %v2113_v38 = vpop.eup %2112 }
 0x333   :  { %v1251_v3 = vmul.f32 %v2113_v38, %v932_v4 }
 0x335   :  { %1254 = vst.msk [vmem:[#allocation2] sm:$0x3] %vm1246_vm2, %v1251_v3 }
 0x33c   :  { %v2774_v32 = vld [vmem:[#allocation2] sm:$0x3] }
 0x33d   :  { %2009 = vmatpush3.xpose.msk.msra.mxu0 %vm1269_vm3, %v2774_v32 }
 0x33e   :  { %2018 = vmatprep.subr.mxu0 %v2880_v19 }
 0x340   :  { %2011 = vmatmul.mubr.msk.f32.vlgmr.msra.gmra.mxu0 %vm1269_vm3, %v2774_v32 }
 0x341   :  { %2020 = vmatprep.mubr.msk.f32.mxu0 %vm2140_vm0, %v2880_v19 }
 0x39e   :  { %v1194_v5 = vpop.f32.mrf.mxu0 }
 0x39f   :  { %v1195_v7 = vadd.f32 %v2717_v20, %v1194_v5  ;;  %v1755_v20 = vsel %vm1576_vm4, 1.0, %v2880_v19 }
 0x3a0   :  { %v1994_v9 = vpop.f32.mrf.mxu0 }
 0x3a1   :  { %v1200_v11 = vmax.f32 %v1195_v7, 0.0 }
 0x3a2   :  { %v1197_v13 = vpop.f32.mrf.mxu0 }
 0x3a3   :  { %v1201_v15 = vpack.c.bf16 %v1200_v11, %v1200_v11 }
 0x3a4   :  { %v1995_v35 = vpop.f32.mrf.mxu0 }
 0x3a5   :  { %2005 = vmatmul.mubr.msk.bf16.vlgmr.msra.gmra.mxu1 %vm818_vm1, %v1201_v15 }
 0x3a6   :  { %2015 = vmatprep.mubr.msk.f32.mxu1 %vm2140_vm0, %v2880_v19 }
 0x400   :  { %v1339_v41 = vpop.f32.mrf.mxu0 }
 0x401   :  { %v1343_v47 = vmul.f32 10.0, %v1339_v41 }
 0x402   :  { %v2012_v52 = vpop.f32.mrf.mxu0 }
 0x403   :  { %v1745_v55 = vadd.f32 -10.0, %v1343_v47 }
 0x405   :  { %v1345_v58 = vmul.f32 1.442695, %v1745_v55 }
 0x407   :  { %2114 = vpow2.f32 %v1345_v58 }
 0x414   :  { %v2115_v34 = vpop.eup %2114 }
 0x415   :  { %v1579_v36 = vmul.f32 %v2115_v34, %v1755_v20 }
 0x417   :  { %v1581_v37 = vsel %vm1580_vm5, %v1579_v36, 0.0 }
 0x418   :  { %1582 = vadd.xlane.f32.xlu1 %v1581_v37 }
 0x465   :  { %v1239_v39 = vpop.f32.mrf.mxu1 }
 0x466   :  { %v1240_v40 = vadd.f32 %v1735_v33, %v1239_v39 }
 0x467   :  { %v2006_v44 = vpop.f32.mrf.mxu1 }
 0x468   :  { %v1255_v45 = vmul.f32 %v1240_v40, %v1240_v40 }
 0x469   :  { %v1242_v46 = vpop.f32.mrf.mxu1 }
 0x46a   :  { %v1256_v50 = vsel %vm1246_vm2, %v1255_v45, 0.0 }
 0x46b   :  { %1257 = vadd.xlane.f32.xlu0 %v1256_v50  ;;  %v2007_v51 = vpop.f32.mrf.mxu1 }
 0x4a1   :  { %v1583_v25 = vpop.xlane.xlu1 %1582 }
 0x4f4   :  { %v1258_v53 = vpop.xlane.xlu0 %1257 }
 0x4f5   :  { %2116 = vrsqrt.f32 %v1258_v53 }
 0x502   :  { %v2117_v56 = vpop.eup %2116 }
 0x503   :  { %v1260_v43 = vmul.f32 %v2117_v56, %v1240_v40 }
 0x505   :  { %1262 = vst.msk [vmem:[#allocation3] sm:$0x3] %vm1246_vm2, %v1260_v43 }
 0x50c   :  { %v1268_v42 = vld [vmem:[#allocation3] sm:$0x3] }
 0x50d   :  { %2014 = vmatpush3.xpose.msk.msra.mxu1 %vm1269_vm3, %v1268_v42  ;;  %2019 = vmatpush3.xpose.msk.msra.mxu0 %vm1269_vm3, %v1268_v42  ;;  %v1596_v21 = vmul.f32 %v1268_v42, %v2774_v32 }
 0x50e   :  { %2023 = vmatprep.subr.mxu1 %v2880_v19 }
 0x50f   :  { %v1597_v24 = vsel %vm1246_vm2, %v1596_v21, 0.0 }
 0x510   :  { %2016 = vmatmul.mubr.msk.f32.vlgmr.msra.gmra.mxu1 %vm1269_vm3, %v1268_v42  ;;  %2021 = vmatmul.mubr.msk.f32.vlgmr.msra.gmra.mxu0 %vm1269_vm3, %v2774_v32 }
 0x511   :  { %2024 = vmatpush3.xpose.msk.msra.mxu1 %vm1269_vm3, %v2774_v32  ;;  %2025 = vmatprep.mubr.msk.f32.mxu1 %vm2140_vm0, %v2880_v19 }
 0x514   :  { %2026 = vmatmul.mubr.msk.f32.vlgmr.msra.gmra.mxu1 %vm1269_vm3, %v1268_v42 }
 0x5d0   :  { %v1416_v48 = vpop.f32.mrf.mxu1  ;;  %v1490_v0 = vpop.f32.mrf.mxu0 }
 0x5d1   :  { %v1420_v59 = vmul.f32 10.0, %v1416_v48  ;;  %v1494_v57 = vmul.f32 10.0, %v1490_v0 }
 0x5d2   :  { %v2017_v54 = vpop.f32.mrf.mxu1  ;;  %v2022_v49 = vpop.f32.mrf.mxu0 }
 0x5d3   :  { %v1748_v33 = vadd.f32 -10.0, %v1420_v59  ;;  %v1751_v63 = vadd.f32 -10.0, %v1494_v57 }
 0x5d4   :  { %v1564_v4 = vpop.f32.mrf.mxu1 }
 0x5d5   :  { %v1422_v6 = vmul.f32 1.442695, %v1748_v33  ;;  %v1496_v8 = vmul.f32 1.442695, %v1751_v63  ;;  %v1568_v10 = vmul.f32 10.0, %v1564_v4 }
 0x5d6   :  { %v2027_v12 = vpop.f32.mrf.mxu1 }
 0x5d7   :  { %2118 = vpow2.f32 %v1422_v6  ;;  %v1754_v2 = vadd.f32 -10.0, %v1568_v10 }
 0x5d8   :  { %2120 = vpow2.f32 %v1496_v8 }
 0x5d9   :  { %v1570_v1 = vmul.f32 1.442695, %v1754_v2 }
 0x5db   :  { %2122 = vpow2.f32 %v1570_v1 }
 0x5e4   :  { %v2119_v19 = vpop.eup %2118 }
 0x5e5   :  { %v2121_v14 = vpop.eup %2120  ;;  %v1588_v16 = vmul.f32 %v2119_v19, %v1755_v20 }
 0x5e6   :  { %v1584_v17 = vsel %vm1580_vm5, %v2121_v14, 0.0 }
 0x5e7   :  { %1585 = vadd.xlane.f32.xlu1 %v1584_v17  ;;  %v1589_v18 = vsel %vm1580_vm5, %v1588_v16, 0.0 }
 0x5e8   :  { %v2123_v22 = vpop.eup %2122  ;;  %1590 = vadd.xlane.f32.xlu0 %v1589_v18 }
 0x5e9   :  { %v1592_v23 = vsel %vm1580_vm5, %v2123_v22, 0.0 }
 0x5eb   :  { %1593 = vadd.xlane.f32.xlu1 %v1592_v23 }
 0x5ec   :  { %1598 = vadd.xlane.f32.xlu0 %v1597_v24 }
 0x670   :  { %v1586_v26 = vpop.xlane.xlu1 %1585 }
 0x671   :  { %v1587_v27 = vadd.f32 %v1586_v26, %v1583_v25  ;;  %v1591_v28 = vpop.xlane.xlu0 %1590 }
 0x673   :  { %2124 = vlog2.f32 %v1587_v27 }
 0x674   :  { %v1594_v29 = vpop.xlane.xlu1 %1593 }
 0x675   :  { %v1595_v30 = vadd.f32 %v1594_v29, %v1591_v28  ;;  %v1599_v5 = vpop.xlane.xlu0 %1598 }
 0x676   :  { %v1633_v9 = vsel %vm1602_vm6, %v1599_v5, 0.0 }
 0x677   :  { %2126 = vlog2.f32 %v1595_v30 }
 0x680   :  { %v2125_v31 = vpop.eup %2124 }
 0x681   :  { %v1601_v38 = vmul.f32 0.6931472, %v2125_v31 }
 0x683   :  { %v1603_v3 = vsel %vm1602_vm6, %v1601_v38, 0.0 }
 0x684   :  { %v2127_v32 = vpop.eup %2126  ;;  %1604 = vadd.xlane.f32.xlu1 %v1603_v3 }
 0x685   :  { %v1617_v7 = vmul.f32 0.6931472, %v2127_v32 }
 0x687   :  { %v1618_v11 = vsel %vm1602_vm6, %v1617_v7, 0.0 }
 0x688   :  { %1634 = vadd.xlane.f32.xlu1 %v1633_v9  ;;  %1619 = vadd.xlane.f32.xlu0 %v1618_v11 }
 0x70d   :  { %v1605_v13 = vpop.xlane.xlu1 %1604 }
 0x70e   :  { %v1606_v15 = vrot.slane %v1605_v13, 4 }
 0x710   :  { %v1607_v35 = vadd.f32 %v1606_v15, %v1605_v13 }
 0x711   :  { %v1620_v41 = vpop.xlane.xlu0 %1619  ;;  %v1635_v47 = vpop.xlane.xlu1 %1634 }
 0x712   :  { %v1608_v52 = vrot.slane %v1607_v35, 2  ;;  %v1621_v55 = vrot.slane %v1620_v41, 4  ;;  %v1636_v58 = vrot.slane %v1635_v47, 4 }
 0x714   :  { %v1622_v60 = vadd.f32 %v1621_v55, %v1620_v41  ;;  %v1637_v61 = vadd.f32 %v1636_v58, %v1635_v47  ;;  %v1609_v62 = vadd.f32 %v1608_v52, %v1607_v35 }
 0x716   :  { %v1623_v20 = vrot.slane %v1622_v60, 2  ;;  %v1638_v34 = vrot.slane %v1637_v61, 2  ;;  %v1610_v36 = vrot.slane %v1609_v62, 1 }
 0x718   :  { %v1624_v37 = vadd.f32 %v1623_v20, %v1622_v60  ;;  %v1639_v39 = vadd.f32 %v1638_v34, %v1637_v61  ;;  %v1611_v40 = vadd.f32 %v1610_v36, %v1609_v62 }
 0x71a   :  { %2028 = vpush %v1611_v40  ;;  %v1625_v44 = vrot.slane %v1624_v37, 1  ;;  %v1640_v45 = vrot.slane %v1639_v39, 1 }
 0x71c   :  { %v1626_v46 = vadd.f32 %v1625_v44, %v1624_v37  ;;  %v1641_v50 = vadd.f32 %v1640_v45, %v1639_v39 }
 0x71e   :  { %2030 = vpush %v1626_v46 }
 0x71f   :  { %2032 = vpush %v1641_v50 }
 0x74b   :  { %s2029_s7 = spop %2028 }
 0x74c   :  { %s1615_s17 = smul.f32 0.5, %s2029_s7 }
 0x74f   :  { %s2031_s18 = spop %2030 }
 0x750   :  { %s1630_s19 = smul.f32 0.5, %s2031_s18  ;;  %s2033_s20 = spop %2032 }
 0x751   :  { %s1645_s21 = smul.f32 0.5, %s2033_s20 }
 0x752   :  { %s1631_s22 = sadd.f32 %s1630_s19, %s1615_s17 }
 0x753   :  { %s1646_s23 = ssub.f32 1.0, %s1645_s21 }
 0x754   :  { %s1632_s2 = smul.f32 0.5, %s1631_s22 }
 0x755   :  { %s1647_s24 = smul.f32 10.0, %s1646_s23 }
 0x757   :  { %s1648_s25 = sadd.f32 %s1647_s24, %s1632_s2 }
 0x759   :  { %1650 = sst [smem:[#allocation4]] %s1648_s25 }
 0x75a   :  { %1658 = dma.smem_to_hbm %s2141_s26, 16, %s2820_s8, [#allocation5]  }
 0x75b   :  { %2136 = dma.done.wait [#allocation5], 16  }
 0x75c   :  { %2137 = vsyncadd [#allocation5], 4294967280 }
 0x75d   :  { %1662 = sfence }
 0x75e   :  { %1663 = vsyncpa [#allocation5], 1 }

</bundles_post_ra>
